<compile_context>
chip_gen: v7x
topology: tpu7x:2x2x1
jax: 0.10.0
libtpu: 0.0.40
codegen_flags: <defaults>
</compile_context>

<pallas_src>
import functools

import jax
import jax.numpy as jnp
from jax.experimental import pallas as pl
from jax.experimental.pallas import tpu as pltpu

LANE = 128                    # TPU vreg lane width
ACC_ROWS = 512                # fixed resident accumulator rows (256 KiB f32)
TARGET_TILE_BYTES = 4 << 20   # ~4 MiB per input tile per pipeline buffer


def _round_up(x, m):
    return ((x + m - 1) // m) * m


def _sublane_multiple(dtype):
    # Native sublane tiling: f32 -> 8, bf16/f16 -> 16, int8/fp8 -> 32.
    return max(8, 32 // jnp.dtype(dtype).itemsize)


def _num_tensorcores():
    """Best-effort TensorCores-per-device query (2 on v7x, else 1)."""
    try:
        info = pltpu.get_tpu_info()
        for attr in ("num_cores", "core_count", "num_tensorcores"):
            val = getattr(info, attr, None)
            if val:
                return max(1, int(val))
    except Exception:
        pass
    try:
        val = getattr(jax.devices()[0], "num_cores", None)
        if val:
            return max(1, int(val))
    except Exception:
        pass
    return 1


def _scaled_mse_kernel(pred_ref, tgt_ref, out_ref, *, rows, block_rows,
                       acc_rows, blocks_per_split, num_blocks):
    """Folds masked (pred - tgt)^2 into the fixed per-split accumulator."""
    c = pl.program_id(0)   # split index ("parallel")
    i = pl.program_id(1)   # reduction step within split ("arbitrary")

    # Output block index depends only on c, so it stays resident in VMEM
    # across the whole i loop: zero it on the first step of each split.
    @pl.when(i == 0)
    def _init():
        out_ref[...] = jnp.zeros_like(out_ref)

    logical_block = c * blocks_per_split + i
    n_groups = block_rows // acc_rows

    def _accumulate(d):
        sq = d * d
        # Sublane-group partial sum down to the fixed (acc_rows, LANE) block.
        acc = sq[0:acc_rows, :]
        for g in range(1, n_groups):
            acc = acc + sq[g * acc_rows:(g + 1) * acc_rows, :]
        out_ref[...] += acc      # pure VPU work; hidden under the input DMA

    # Fast path: block lies entirely inside the real array (vast majority).
    full = (logical_block + 1) * block_rows <= rows

    @pl.when(full)
    def _fast():
        d = pred_ref[...].astype(jnp.float32) - tgt_ref[...].astype(jnp.float32)
        _accumulate(d)

    # Edge path: ragged last block only.  The clamped duplicate block of the
    # second split (logical_block >= num_blocks) skips compute entirely.
    edge = jnp.logical_and(jnp.logical_not(full), logical_block < num_blocks)

    @pl.when(edge)
    def _edge():
        row = jax.lax.broadcasted_iota(jnp.int32, (block_rows, LANE), 0)
        valid = (logical_block * block_rows + row) < rows
        d = pred_ref[...].astype(jnp.float32) - tgt_ref[...].astype(jnp.float32)
        d = jnp.where(valid, d, jnp.float32(0.0))   # mask BEFORE squaring
        _accumulate(d)


def scaled_mse_loss(pred, target, scale=1.0e6):
    assert pred.shape == target.shape, "pred and target must have same shape"
    n = pred.size
    pred_flat = jnp.ravel(pred)
    tgt_flat = jnp.ravel(target)

    rows = n // LANE
    n_main = rows * LANE

    total_sq = jnp.float32(0.0)

    if rows > 0:
        pred2d = pred_flat[:n_main].reshape(rows, LANE)
        tgt2d = tgt_flat[:n_main].reshape(rows, LANE)

        sub = max(_sublane_multiple(pred2d.dtype), _sublane_multiple(tgt2d.dtype))
        itemsize = max(pred2d.dtype.itemsize, tgt2d.dtype.itemsize)

        if rows < ACC_ROWS:
            # Tiny input: one block, accumulator == block.
            block_rows = _round_up(rows, sub)
            acc_rows = block_rows
        else:
            # Large input: blocks are multiples of ACC_ROWS, <= rows,
            # sized to ~TARGET_TILE_BYTES per input per pipeline buffer.
            max_rows = max(ACC_ROWS,
                           (TARGET_TILE_BYTES // (LANE * itemsize))
                           // ACC_ROWS * ACC_ROWS)
            block_rows = min(max_rows, (rows // ACC_ROWS) * ACC_ROWS)
            acc_rows = ACC_ROWS

        num_blocks = pl.cdiv(rows, block_rows)

        num_splits = _num_tensorcores()
        if num_blocks < 2 * num_splits:
            num_splits = 1
        blocks_per_split = pl.cdiv(num_blocks, num_splits)

        if num_blocks % num_splits == 0:
            def in_map(c, i):
                return (c * blocks_per_split + i, 0)
        else:
            # The last split would step one block past the end; clamp the DMA
            # to a valid block (its compute is skipped in-kernel).
            def in_map(c, i):
                return (jnp.minimum(c * blocks_per_split + i, num_blocks - 1), 0)

        out_rows = num_splits * acc_rows
        in_bytes = (pred2d.size * pred2d.dtype.itemsize
                    + tgt2d.size * tgt2d.dtype.itemsize)
        cost = pl.CostEstimate(
            flops=3 * n_main,                  # sub + mul + add per element
            transcendentals=0,
            bytes_accessed=in_bytes + out_rows * LANE * 4,
        )

        # 2 inputs x 2 pipeline buffers + double-buffered accumulator + slack.
        vmem_needed = (2 * block_rows * LANE
                       * (pred2d.dtype.itemsize + tgt2d.dtype.itemsize)
                       + 2 * acc_rows * LANE * 4)
        vmem_limit = int(min(max(2 * vmem_needed, 32 << 20), 48 << 20))

        kernel = functools.partial(
            _scaled_mse_kernel,
            rows=rows,
            block_rows=block_rows,
            acc_rows=acc_rows,
            blocks_per_split=blocks_per_split,
            num_blocks=num_blocks,
        )

        partials = pl.pallas_call(
            kernel,
            out_shape=jax.ShapeDtypeStruct((out_rows, LANE), jnp.float32),
            grid_spec=pltpu.PrefetchScalarGridSpec(
                num_scalar_prefetch=0,
                grid=(num_splits, blocks_per_split),
                in_specs=[
                    pl.BlockSpec((block_rows, LANE), in_map),
                    pl.BlockSpec((block_rows, LANE), in_map),
                ],
                out_specs=pl.BlockSpec((acc_rows, LANE), lambda c, i: (c, 0)),
            ),
            compiler_params=pltpu.CompilerParams(
                dimension_semantics=("parallel", "arbitrary"),
                vmem_limit_bytes=vmem_limit),
            cost_estimate=cost,
        )(pred2d, tgt2d)

        total_sq = total_sq + jnp.sum(partials)

    if n_main < n:
        # Ragged tail of < 128 elements: trivial, done in plain JAX instead of
        # materializing a padded copy of the whole tensor.
        dt = (pred_flat[n_main:].astype(jnp.float32)
              - tgt_flat[n_main:].astype(jnp.float32))
        total_sq = total_sq + jnp.sum(dt * dt)

    return total_sq * jnp.float32(float(scale) / float(n))


if __name__ == "__main__":
    key = jax.random.PRNGKey(0)
    k1, k2 = jax.random.split(key)
    shape = (2, 4, 16, 16)   # small NCHW prediction/target pair
    pred = jax.random.normal(k1, shape, dtype=jnp.float32)
    target = jax.random.normal(k2, shape, dtype=jnp.float32)

    loss_fn = jax.jit(lambda p, t: scaled_mse_loss(p, t, scale=1.0e6))
    loss = jax.block_until_ready(loss_fn(pred, target))

    # Reference check (plain JAX).
    ref = jnp.mean((pred - target) ** 2) * 1.0e6
    assert jnp.allclose(loss, ref, rtol=1e-5, atol=1e-3), (loss, ref)

    print("KERNEL_OK")
</pallas_src>

<mosaic_0001>
module attributes {stable_mosaic.version = 11 : i64} {
  func.func @_scaled_mse_kernel(%arg0: i32, %arg1: i32, %arg2: memref<16x128xf32, #tpu.memory_space<vmem>>, %arg3: memref<16x128xf32, #tpu.memory_space<vmem>>, %arg4: memref<16x128xf32, #tpu.memory_space<vmem>>) attributes {dimension_semantics = [#tpu.dimension_semantics<parallel>, #tpu.dimension_semantics<arbitrary>], iteration_bounds = array<i64: 1, 1>, scalar_prefetch = 0 : i64, scratch_operands = 0 : i64, tpu.core_type = #tpu.core_type<tc>, window_params = [{transform_indices = @transform_0, window_bounds = array<i64: 16, 128>}, {transform_indices = @transform_1, window_bounds = array<i64: 16, 128>}, {transform_indices = @transform_2, window_bounds = array<i64: 16, 128>}]} {
    %c0_i32 = arith.constant 0 : i32
    %0 = arith.cmpi eq, %arg1, %c0_i32 : i32
    %1 = arith.extui %0 : i1 to i32
    %c0_i32_0 = arith.constant 0 : i32
    %2 = arith.cmpi ne, %1, %c0_i32_0 : i32
    scf.if %2 {
      %cst = arith.constant 0.000000e+00 : f32
      %15 = vector.broadcast %cst : f32 to vector<16x128xf32>
      %c0 = arith.constant 0 : index
      %c0_6 = arith.constant 0 : index
      %16 = vector.load %arg4[%c0, %c0_6] : memref<16x128xf32, #tpu.memory_space<vmem>>, vector<16x128xf32>
      tpu.vector_store %arg4[%c0, %c0_6], %15 {strides = array<i32>} : memref<16x128xf32, #tpu.memory_space<vmem>>, vector<16x128xf32>,
    } else {
    }
    %c1_i32 = arith.constant 1 : i32
    %3 = arith.muli %arg0, %c1_i32 : i32
    %4 = arith.addi %3, %arg1 : i32
    %c1_i32_1 = arith.constant 1 : i32
    %5 = arith.addi %4, %c1_i32_1 : i32
    %c16_i32 = arith.constant 16 : i32
    %6 = arith.muli %5, %c16_i32 : i32
    %c16_i32_2 = arith.constant 16 : i32
    %7 = arith.cmpi sle, %6, %c16_i32_2 : i32
    %8 = arith.extui %7 : i1 to i32
    %c0_i32_3 = arith.constant 0 : i32
    %9 = arith.cmpi ne, %8, %c0_i32_3 : i32
    scf.if %9 {
      %c0 = arith.constant 0 : index
      %c0_6 = arith.constant 0 : index
      %15 = vector.load %arg2[%c0, %c0_6] : memref<16x128xf32, #tpu.memory_space<vmem>>, vector<16x128xf32>
      %c0_7 = arith.constant 0 : index
      %c0_8 = arith.constant 0 : index
      %16 = vector.load %arg3[%c0_7, %c0_8] : memref<16x128xf32, #tpu.memory_space<vmem>>, vector<16x128xf32>
      %17 = arith.subf %15, %16 : vector<16x128xf32>
      %18 = arith.mulf %17, %17 : vector<16x128xf32>
      %c0_9 = arith.constant 0 : index
      %c0_10 = arith.constant 0 : index
      %19 = vector.load %arg4[%c0_9, %c0_10] : memref<16x128xf32, #tpu.memory_space<vmem>>, vector<16x128xf32>
      %20 = arith.addf %19, %18 : vector<16x128xf32>
      %c0_11 = arith.constant 0 : index
      %c0_12 = arith.constant 0 : index
      %21 = vector.load %arg4[%c0_11, %c0_12] : memref<16x128xf32, #tpu.memory_space<vmem>>, vector<16x128xf32>
      tpu.vector_store %arg4[%c0_11, %c0_12], %20 {strides = array<i32>} : memref<16x128xf32, #tpu.memory_space<vmem>>, vector<16x128xf32>,
    } else {
    }
    %true = arith.constant true
    %10 = arith.xori %7, %true : i1
    %c1_i32_4 = arith.constant 1 : i32
    %11 = arith.cmpi slt, %4, %c1_i32_4 : i32
    %12 = arith.andi %10, %11 : i1
    %13 = arith.extui %12 : i1 to i32
    %c0_i32_5 = arith.constant 0 : i32
    %14 = arith.cmpi ne, %13, %c0_i32_5 : i32
    scf.if %14 {
      %15 = tpu.iota {dimensions = array<i32: 0>} : vector<16x128xi32>
      %c16_i32_6 = arith.constant 16 : i32
      %16 = arith.muli %4, %c16_i32_6 : i32
      %17 = vector.broadcast %16 : i32 to vector<16x128xi32>
      %18 = arith.addi %17, %15 : vector<16x128xi32>
      %c16_i32_7 = arith.constant 16 : i32
      %19 = vector.broadcast %c16_i32_7 : i32 to vector<16x128xi32>
      %20 = arith.cmpi slt, %18, %19 : vector<16x128xi32>
      %c0 = arith.constant 0 : index
      %c0_8 = arith.constant 0 : index
      %21 = vector.load %arg2[%c0, %c0_8] : memref<16x128xf32, #tpu.memory_space<vmem>>, vector<16x128xf32>
      %c0_9 = arith.constant 0 : index
      %c0_10 = arith.constant 0 : index
      %22 = vector.load %arg3[%c0_9, %c0_10] : memref<16x128xf32, #tpu.memory_space<vmem>>, vector<16x128xf32>
      %23 = arith.subf %21, %22 : vector<16x128xf32>
      %cst = arith.constant 0.000000e+00 : f32
      %24 = vector.broadcast %cst : f32 to vector<16x128xf32>
      %25 = arith.select %20, %23, %24 : vector<16x128xi1>, vector<16x128xf32>
      %26 = arith.mulf %25, %25 : vector<16x128xf32>
      %c0_11 = arith.constant 0 : index
      %c0_12 = arith.constant 0 : index
      %27 = vector.load %arg4[%c0_11, %c0_12] : memref<16x128xf32, #tpu.memory_space<vmem>>, vector<16x128xf32>
      %28 = arith.addf %27, %26 : vector<16x128xf32>
      %c0_13 = arith.constant 0 : index
      %c0_14 = arith.constant 0 : index
      %29 = vector.load %arg4[%c0_13, %c0_14] : memref<16x128xf32, #tpu.memory_space<vmem>>, vector<16x128xf32>
      tpu.vector_store %arg4[%c0_13, %c0_14], %28 {strides = array<i32>} : memref<16x128xf32, #tpu.memory_space<vmem>>, vector<16x128xf32>,
    } else {
    }
    return
  }
  func.func @transform_0(%arg0: i32, %arg1: i32) -> (i32, i32) {
    %c1_i32 = arith.constant 1 : i32
    %0 = arith.muli %arg0, %c1_i32 : i32
    %1 = arith.addi %0, %arg1 : i32
    %c0_i32 = arith.constant 0 : i32
    %c0_i32_0 = arith.constant 0 : i32
    return %1, %c0_i32 : i32, i32
  }
  func.func @transform_1(%arg0: i32, %arg1: i32) -> (i32, i32) {
    %c1_i32 = arith.constant 1 : i32
    %0 = arith.muli %arg0, %c1_i32 : i32
    %1 = arith.addi %0, %arg1 : i32
    %c0_i32 = arith.constant 0 : i32
    %c0_i32_0 = arith.constant 0 : i32
    return %1, %c0_i32 : i32, i32
  }
  func.func @transform_2(%arg0: i32, %arg1: i32) -> (i32, i32) {
    %c0_i32 = arith.constant 0 : i32
    %c0_i32_0 = arith.constant 0 : i32
    return %arg0, %c0_i32 : i32, i32
  }
}

</mosaic_0001>

<bundles_post_ra>
// kernel: _lambda_.1
= control target key start
LH: loop header
LB: loop body
LE: loop exit
PB: predicated region body
PF: predicated region fallthrough
CT: control target
= control target key end

     0   :  { %s163_s0 = inlined_call_operand.vmem [shape: f32[16,128], index: 0, kind: input, shape index: {}]   ;;  %s164_s1 = inlined_call_operand.vmem [shape: f32[16,128], index: 1, kind: input, shape index: {}]   ;;  %s165_s2 = inlined_call_operand.vmem [shape: f32[16,128], index: 2, kind: output, shape index: {}]  }
   0x1   :  { %v68_v0 = vld [vmem:[%s163_s0] sm:$0xff]  ;;  %v69_v2 = vld [vmem:[%s163_s0 + $0x8] sm:$0xff] }
   0x2   :  { %v70_v1 = vld [vmem:[%s164_s1] sm:$0xff]  ;;  %v71_v4 = vld [vmem:[%s164_s1 + $0x8] sm:$0xff] }
   0x3   :  { %v72_v3 = vsub.f32 %v68_v0, %v70_v1  ;;  %v73_v5 = vsub.f32 %v69_v2, %v71_v4 }
   0x5   :  { %v74_v6 = vmul.f32 %v72_v3, %v72_v3  ;;  %v75_v7 = vmul.f32 %v73_v5, %v73_v5 }
   0x7   :  { %80 = vst [vmem:[%s165_s2] sm:$0xff] %v74_v6  ;;  %81 = vst [vmem:[%s165_s2 + $0x8] sm:$0xff] %v75_v7 }

</bundles_post_ra>
